<compile_context>
chip_gen: v5e
topology: v5e:2x2
jax: 0.10.0
libtpu: 0.0.40
codegen_flags: <defaults>
</compile_context>

<pallas_src>
import jax
import jax.numpy as jnp
from jax.experimental import pallas as pl
from jax.experimental.pallas import tpu as pltpu


def extra_emb_kernel(msa_ref, w_ref, seq_emb_ref, out_ref):
    # msa_ref:     (TN, L, d_init)  bf16
    # w_ref:       (d_init, d_msa)  bf16
    # seq_emb_ref: (L, d_msa)       f32   (embedding of seq for this batch + bias)
    # out_ref:     (TN, L, d_msa)
    tn, l, d_init = msa_ref.shape
    d_msa = w_ref.shape[1]
    # One big MXU matmul over the folded (TN*L) rows.  L is a multiple of 8, so
    # the leading-dim reshape is layout-preserving (no VMEM copy).
    x = jnp.dot(msa_ref[...].reshape(tn * l, d_init), w_ref[...],
                preferred_element_type=jnp.float32)
    out_ref[...] = (x.reshape(tn, l, d_msa)
                    + seq_emb_ref[...][None, :, :]).astype(out_ref.dtype)


def _pick_tn(B, N, L, max_rows=4096):
    """Largest divisor TN of N with TN*L <= max_rows; keep >=2 programs along N
    when B == 1 so v7x's two TensorCores both get work."""
    divisors = [d for d in range(1, N + 1) if N % d == 0]
    candidates = [d for d in divisors if d * L <= max_rows] or [1]
    tn = max(candidates)
    if B == 1 and N // tn < 2:
        smaller = [d for d in candidates if d < tn]
        if smaller:
            tn = max(smaller)
    return tn


def extra_emb_forward(msa, seq, emb_w, emb_b, emb_q_w, out_dtype=jnp.float32):
    """msa: (B, N, L, d_init) float, seq: (B, L) int32.
    emb_w: (d_init, d_msa), emb_b: (d_msa,), emb_q_w: (22, d_msa)."""
    B, N, L, d_init = msa.shape
    d_msa = emb_w.shape[1]

    # Glue in plain JAX: embedding gather, bias fold, bf16 cast of the matmul
    # streams.  The hot (matmul + broadcast-add) path runs inside the kernel.
    seq_emb = jnp.take(emb_q_w, seq, axis=0) + emb_b      # (B, L, d_msa) f32
    msa_bf16 = msa.astype(jnp.bfloat16)
    w_bf16 = emb_w.astype(jnp.bfloat16)

    tn = _pick_tn(B, N, L)
    grid = (B, N // tn)

    out_bytes = B * N * L * d_msa * jnp.dtype(out_dtype).itemsize
    cost = pl.CostEstimate(
        flops=2 * B * N * L * d_init * d_msa,
        transcendentals=0,
        bytes_accessed=(msa_bf16.size * 2 + w_bf16.size * 2
                        + seq_emb.size * 4 + out_bytes),
    )

    out = pl.pallas_call(
        extra_emb_kernel,
        out_shape=jax.ShapeDtypeStruct((B, N, L, d_msa), out_dtype),
        grid_spec=pltpu.PrefetchScalarGridSpec(
            num_scalar_prefetch=0,
            grid=grid,
            in_specs=[
                # msa block: (TN, L, d_init) slab per (b, n-chunk)
                pl.BlockSpec((None, tn, L, d_init), lambda b, n: (b, n, 0, 0)),
                # linear weight: whole matrix, same for every program
                pl.BlockSpec((d_init, d_msa), lambda b, n: (0, 0)),
                # seq embedding (+bias): (L, d_msa) slab for batch b, reused
                # (broadcast) across the N-chunk inside the kernel
                pl.BlockSpec((None, L, d_msa), lambda b, n: (b, 0, 0)),
            ],
            out_specs=pl.BlockSpec((None, tn, L, d_msa),
                                   lambda b, n: (b, n, 0, 0)),
        ),
        compiler_params=pltpu.CompilerParams(
            dimension_semantics=("parallel", "parallel"),
            vmem_limit_bytes=32 * 1024 * 1024),
        cost_estimate=cost,
    )(msa_bf16, w_bf16, seq_emb)
    return out


def _reference(msa, seq, emb_w, emb_b, emb_q_w):
    lin = jnp.einsum("bnli,io->bnlo", msa, emb_w) + emb_b
    seq_emb = jnp.take(emb_q_w, seq, axis=0)            # (B, L, d_msa)
    return lin + seq_emb[:, None, :, :]


if __name__ == "__main__":
    # Small shapes consistent with the module's forward.
    B, N, L = 2, 4, 16
    d_init = 22 + 1 + 2   # 25
    d_msa = 32

    key = jax.random.PRNGKey(0)
    k_msa, k_seq, k_w, k_q = jax.random.split(key, 4)

    msa = jax.random.normal(k_msa, (B, N, L, d_init), dtype=jnp.float32)
    seq = jax.random.randint(k_seq, (B, L), 0, 22, dtype=jnp.int32)

    # Deterministic synthetic parameters:
    # nn.Linear(d_init, d_msa): lecun-normal weight, zero bias (reset_parameter).
    emb_w = (jax.random.normal(k_w, (d_init, d_msa), dtype=jnp.float32)
             * (1.0 / jnp.sqrt(d_init)))
    emb_b = jnp.zeros((d_msa,), dtype=jnp.float32)
    # nn.Embedding(22, d_msa): standard normal weight.
    emb_q_w = jax.random.normal(k_q, (22, d_msa), dtype=jnp.float32)

    out = extra_emb_forward(msa, seq, emb_w, emb_b, emb_q_w)
    jax.block_until_ready(out)

    # Reference with the same bf16 cast of the matmul operands (MXU products are
    # exact in f32; only accumulation order differs), so tolerance stays tight.
    msa_c = msa.astype(jnp.bfloat16).astype(jnp.float32)
    w_c = emb_w.astype(jnp.bfloat16).astype(jnp.float32)
    ref = _reference(msa_c, seq, w_c, emb_b, emb_q_w)

    assert out.shape == (B, N, L, d_msa)
    assert jnp.allclose(out, ref, atol=1e-4, rtol=1e-4)

    # Sanity check against the full-f32 reference (bf16 input rounding only).
    ref_f32 = _reference(msa, seq, emb_w, emb_b, emb_q_w)
    assert jnp.allclose(out, ref_f32, atol=5e-2, rtol=5e-2)

    print("KERNEL_OK")
</pallas_src>

<mosaic_0001>
module attributes {stable_mosaic.version = 11 : i64} {
  func.func @extra_emb_kernel(%arg0: i32, %arg1: i32, %arg2: memref<1x4x16x25xbf16, #tpu.memory_space<vmem>>, %arg3: memref<25x32xbf16, #tpu.memory_space<vmem>>, %arg4: memref<1x16x32xf32, #tpu.memory_space<vmem>>, %arg5: memref<1x4x16x32xf32, #tpu.memory_space<vmem>>) attributes {dimension_semantics = [#tpu.dimension_semantics<parallel>, #tpu.dimension_semantics<parallel>], iteration_bounds = array<i64: 2, 1>, scalar_prefetch = 0 : i64, scratch_operands = 0 : i64, tpu.core_type = #tpu.core_type<tc>, window_params = [{transform_indices = @transform_0, window_bounds = array<i64: 1, 4, 16, 25>}, {pipeline_mode = #tpu.pipeline_mode<synchronous>, transform_indices = @transform_1, window_bounds = array<i64: 25, 32>}, {transform_indices = @transform_2, window_bounds = array<i64: 1, 16, 32>}, {transform_indices = @transform_3, window_bounds = array<i64: 1, 4, 16, 32>}]} {
    %c0 = arith.constant 0 : index
    %c0_0 = arith.constant 0 : index
    %c0_1 = arith.constant 0 : index
    %c0_2 = arith.constant 0 : index
    %0 = vector.load %arg2[%c0, %c0_0, %c0_1, %c0_2] : memref<1x4x16x25xbf16, #tpu.memory_space<vmem>>, vector<1x4x16x25xbf16>
    %1 = vector.shape_cast %0 : vector<1x4x16x25xbf16> to vector<4x16x25xbf16>
    %2 = vector.shape_cast %1 : vector<4x16x25xbf16> to vector<64x25xbf16>
    %c0_3 = arith.constant 0 : index
    %c0_4 = arith.constant 0 : index
    %3 = vector.load %arg3[%c0_3, %c0_4] : memref<25x32xbf16, #tpu.memory_space<vmem>>, vector<25x32xbf16>
    %cst = arith.constant dense<0.000000e+00> : vector<64x32xf32>
    %4 = tpu.matmul %2, %3, %cst {dimension_numbers = #tpu.dot_dimension_numbers<[1], [0], [0], [1], [0, 0, 1, 1], [], []>} : vector<64x25xbf16>, vector<25x32xbf16>, vector<64x32xf32> -> vector<64x32xf32>
    %5 = vector.shape_cast %4 : vector<64x32xf32> to vector<4x16x32xf32>
    %c0_5 = arith.constant 0 : index
    %c0_6 = arith.constant 0 : index
    %c0_7 = arith.constant 0 : index
    %6 = vector.load %arg4[%c0_5, %c0_6, %c0_7] : memref<1x16x32xf32, #tpu.memory_space<vmem>>, vector<1x16x32xf32>
    %7 = vector.shape_cast %6 : vector<1x16x32xf32> to vector<16x32xf32>
    %8 = vector.shape_cast %7 : vector<16x32xf32> to vector<1x16x32xf32>
    %9 = vector.broadcast %8 : vector<1x16x32xf32> to vector<4x16x32xf32>
    %10 = arith.addf %5, %9 : vector<4x16x32xf32>
    %c0_8 = arith.constant 0 : index
    %c0_9 = arith.constant 0 : index
    %c0_10 = arith.constant 0 : index
    %c0_11 = arith.constant 0 : index
    %11 = vector.load %arg5[%c0_8, %c0_9, %c0_10, %c0_11] : memref<1x4x16x32xf32, #tpu.memory_space<vmem>>, vector<1x4x16x32xf32>
    %12 = vector.shape_cast %11 : vector<1x4x16x32xf32> to vector<4x16x32xf32>
    %13 = vector.shape_cast %10 : vector<4x16x32xf32> to vector<1x4x16x32xf32>
    tpu.vector_store %arg5[%c0_8, %c0_9, %c0_10, %c0_11], %13 {strides = array<i32>} : memref<1x4x16x32xf32, #tpu.memory_space<vmem>>, vector<1x4x16x32xf32>,
    return
  }
  func.func @transform_0(%arg0: i32, %arg1: i32) -> (i32, i32, i32, i32) {
    %c0_i32 = arith.constant 0 : i32
    %c0_i32_0 = arith.constant 0 : i32
    %c0_i32_1 = arith.constant 0 : i32
    return %arg0, %arg1, %c0_i32, %c0_i32_0 : i32, i32, i32, i32
  }
  func.func @transform_1(%arg0: i32, %arg1: i32) -> (i32, i32) {
    %c0_i32 = arith.constant 0 : i32
    %c0_i32_0 = arith.constant 0 : i32
    %c0_i32_1 = arith.constant 0 : i32
    return %c0_i32, %c0_i32_0 : i32, i32
  }
  func.func @transform_2(%arg0: i32, %arg1: i32) -> (i32, i32, i32) {
    %c0_i32 = arith.constant 0 : i32
    %c0_i32_0 = arith.constant 0 : i32
    %c0_i32_1 = arith.constant 0 : i32
    return %arg0, %c0_i32, %c0_i32_0 : i32, i32, i32
  }
  func.func @transform_3(%arg0: i32, %arg1: i32) -> (i32, i32, i32, i32) {
    %c0_i32 = arith.constant 0 : i32
    %c0_i32_0 = arith.constant 0 : i32
    %c0_i32_1 = arith.constant 0 : i32
    return %arg0, %arg1, %c0_i32, %c0_i32_0 : i32, i32, i32, i32
  }
}

</mosaic_0001>

<bundles_post_ra>
// kernel: tpu_custom_call.1
= control target key start
LH: loop header
LB: loop body
LE: loop exit
PB: predicated region body
PF: predicated region fallthrough
CT: control target
= control target key end

     0   :  { %s1068_s0 = inlined_call_operand.hbm [shape: bf16[2,4,16,25], index: 0, kind: input, shape index: {}]   ;;  %s1069_s1 = inlined_call_operand.hbm [shape: bf16[25,32], index: 1, kind: input, shape index: {}]   ;;  %s1070_s2 = inlined_call_operand.hbm [shape: f32[2,16,32], index: 2, kind: input, shape index: {}]   ;;  %s1071_s3 = inlined_call_operand.hbm [shape: f32[2,4,16,32], index: 3, kind: output, shape index: {}]  }
   0x1   :  { %1072 = sst [smem:[#allocation13_spill]] %s1068_s0 }
   0x2   :  { %8 = vsyncpa [#allocation3], 0 }
   0x3   :  { %10 = vsyncpa [#allocation3 + $0x1], 0 }
   0x4   :  { %11 = vsyncpa [#allocation6], 0 }
   0x5   :  { %12 = vsyncpa [#allocation4], 0 }
   0x6   :  { %14 = vsyncpa [#allocation4 + $0x1], 0  ;;  %s875_s12 = smov 0   ;;  %s877_s13 = smov 0  }
   0x7   :  { %s879_s14 = smov 0   ;;  %s881_s15 = smov 0  }
   0x8   :  { %s883_s16 = smov 0   ;;  %s885_s17 = smov 0  }
   0x9 LB: > { %s32_s18 = sadd.s32 1, %s841_s16  ;;  %s41_s19 = sadd.s32 1, %s833_s14  ;;  %s845_s17 = sphi %s885_s17, %s20_s17   ;;  %s841_s16 = sphi %s883_s16, %s1084_s16   ;;  %s837_s15 = sphi %s881_s15, %s1083_s15   ;;  %s833_s14 = sphi %s879_s14, %s1082_s14   ;;  %s829_s13 = sphi %s877_s13, %s1081_s13   ;;  %s825_s12 = sphi %s875_s12, %s1080_s12  }
   0xa   : > { %p34_p0 = scmp.ge.s32.totalorder %s32_s18, 2  ;;  %p48_p1 = scmp.ne.s32.totalorder %s833_s14, %s829_s13 }
   0xb   : > { %p49_p2 = scmp.eq.s32.totalorder %s845_s17, 0  ;;  %p520_p4 = scmp.ge.s32.totalorder %s845_s17, 2 }
   0xc   : > { %s1086_s18 = smov (%p34_p0, %s32_s18), 0  ;;  %p606_p6 = scmp.lt.s32.totalorder %s845_s17, 2 }
   0xd   : > { %p915_p3 = por %p49_p2, %p48_p1  ;;  %s36_s21 = ssub.s32 %s841_s16, %s1086_s18 }
   0xe   : > { %p39_p5 = scmp.eq.s32.totalorder %s36_s21, 0  ;;  %s167_s22 = sand.u32 1, %s845_s17  }
   0xf   : > { %s169_s23 = sand.u32 1, %s833_s14   ;;  %s565_s26 = sshll.u32 %s841_s16, 5 }
  0x10   : > { %s926_s24 = scalar_select %p39_p5, %s833_s14, %s41_s19  }
  0x11   : > { %s521_s25 = sshll.u32 %s169_s23, 5  ;;  %s1074_s0 = sld [smem:[#allocation13_spill]] }
  0x12   : > { %s171_s30 = scalar_lea.vmem [#allocation2], %s521_s25  ;;  %p934_p7 = pnand %p606_p6, %p915_p3 }
  0x13   : > { %s182_s4 = sshll.u32 %s171_s30, 4  ;;  %s524_s7 = sshll.u32 %s169_s23, 4  ;;  %s183_s4 = int_to_ptr.vmem [resolvable:$true] %s182_s4 }
  0x14   : > { %s938_s8 = scalar_lea.sflag [#allocation3], %s167_s22  ;;  %s847_s9 = smov 64  }
  0x15   : > { %s848_s10 = smov 4   ;;  %s196_s11 = scalar_lea.vmem [#allocation7], %s524_s7 }
  0x16   : > { %s946_s19 = sshll.u32 %s196_s11, 4  ;;  %s949_s20 = sadd.s32 4294967295, %s845_s17   ;;  %s205_s19 = int_to_ptr.vmem [resolvable:$true] %s946_s19 }
  0x17   : > { %s179_s29 = scalar_lea.hbm %s1074_s0, %s565_s26  ;;  %s517_s21 = sadd.s32 4294967294, %s845_s17  }
  0x18   : > { %s180_s5 = sshll.u32 %s179_s29, 4  ;;  %p54_p8 = scmp.ne.s32.totalorder %s829_s13, %s825_s12  ;;  %s181_s5 = int_to_ptr.hbm [resolvable:$true] %s180_s5 }
  0x19   : > { %597 = dma.hbm_to_vmem [thread:$0]  (!%p934_p7), %s181_s5, 512, %s183_s4, %s938_s8, %s847_s9, %s847_s9, %s848_s10  }
  0x1a   : > { %p55_p9 = scmp.eq.s32.totalorder %s949_s20, 0  ;;  %p127_p10 = scmp.eq.s32.totalorder %s949_s20, 1 }
  0x1b   : > { %p133_p11 = scmp.eq.s32.totalorder %s517_s21, 1  ;;  %p518_p13 = scmp.ge.s32.totalorder %s845_s17, 1 }
  0x1c   : > { %p958_p12 = por %p55_p9, %p54_p8  ;;  %p966_p0 = por %p127_p10, %p48_p1 }
  0x1d   : > { %p970_p2 = por %p133_p11, %p54_p8  ;;  %p140_p3 = scmp.lt.s32.totalorder %s845_s17, 3 }
  0x1e   : > { %s151_s28 = sshll.u32 %s1069_s1, 4  ;;  %s849_s30 = smov [#allocation5]   ;;  %s152_s28 = int_to_ptr.hbm [resolvable:$true] %s151_s28 }
  0x1f   : > { %p978_p5 = pnand %p518_p13, %p140_p3  ;;  %s153_s4 = sshll.u32 %s849_s30, 4  ;;  %s154_s4 = int_to_ptr.vmem [resolvable:$true] %s153_s4 }
  0x20   : > { %s566_s5 = sshll.u32 %s841_s16, 4  ;;  %s850_s27 = smov 128  }
  0x21   : > { %p590_p1 = pneg %p978_p5  ;;  %s201_s21 = scalar_lea.hbm %s1070_s2, %s566_s5 }
  0x22   : > { %s202_s26 = sshll.u32 %s201_s21, 4  ;;  %s851_s0 = smov 8   ;;  %s203_s26 = int_to_ptr.hbm [resolvable:$true] %s202_s26 }
  0x23   : > { %p591_p6 = pnand %p590_p1, %p55_p9  ;;  %216 = sbr.rel (%p978_p5) target bundleno = 208 (0xd0), region = 32 }
  0x24   : > { %600 = dma.hbm_to_vmem [thread:$0]  (!%p934_p7), %s203_s26, 256, %s205_s19, %s938_s8, %s850_s27, %s850_s27, %s851_s0  }
  0x25   : > { %593 = dma.hbm_to_vmem [thread:$0]  (!%p591_p6), %s152_s28, 256, %s154_s4, [#allocation6], %s847_s9, %s847_s9, %s848_s10  }
  0x26   : > { %s218_s30 = sand.u32 (!%p978_p5), 1, %s949_s20   ;;  %s1001_s5 = sand.u32 (!%p978_p5), 1, %s829_s13  }
  0x27   : > { %s528_s7 = sshll.u32 (!%p978_p5), %s1001_s5, 5  ;;  %s219_s11 = scalar_lea.sflag (!%p978_p5), [#allocation3], %s218_s30 }
  0x28   : > { %s222_s21 = scalar_lea.vmem [#allocation2], %s528_s7 }
  0x29   : > { %808 = dma.done.wait (%p958_p12), %s219_s11, 512  }
  0x2a   : > { %810 = vsyncadd (%p958_p12), %s219_s11, 4294966784 }
  0x2b   : > { %812 = dma.done.wait (%p55_p9), [#allocation6], 256  }
  0x2c   : > { %814 = vsyncadd (%p55_p9), [#allocation6], 4294967040  ;;  %s530_s0 = sshll.u32 %s1001_s5, 4 }
  0x2d   : > { %s1013_s6 = scalar_lea.vmem [#allocation7], %s530_s0 }
  0x2e   : > { %816 = dma.done.wait (%p958_p12), %s219_s11, 256  }
  0x2f   : > { %818 = vsyncadd (%p958_p12), %s219_s11, 4294967040  ;;  %vm325_vm0 = vcmask 1043456   ;;  %vm326_vm1 = vcmask 1044480   ;;  %v852_v0 = vmov 65535   ;;  %v554_v2 = vld [vmem:[#allocation5 + $0x8] sm:$0xf] }
  0x30   : > { %v327_v1 = vsel %vm325_vm0, 4294967295, %v852_v0  ;;  %v572_v3 = vld [vmem:[#allocation5 + $0x8] sm:$0x10]  ;;  %v571_v7 = vld [vmem:[#allocation5] sm:$0xff]  ;;  %vm312_vm2 = vcmask 203776   ;;  %v569_v10 = vld [vmem:[%s222_s21 + $0x10] sm:$0xff] }
  0x31   : > { %v328_v4 = vsel %vm326_vm1, %v327_v1, 0  ;;  %v555_v5 = vor.u32 %v572_v3, %v554_v2  ;;  %v567_v8 = vld [vmem:[%s222_s21] sm:$0xff]  ;;  %v568_v9 = vld [vmem:[%s222_s21 + $0x8] sm:$0xff]  ;;  %v570_v11 = vld [vmem:[%s222_s21 + $0x18] sm:$0xff]  ;;  %s531_s8 = sshll.u32 %s1001_s5, 6  ;;  %vm371_vm3 = vcmask 261120  }
  0x32   : > { %v361_v12 = vld [vmem:[%s1013_s6] sm:$0xff]  ;;  %s265_s9 = scalar_lea.vmem [#allocation8], %s531_s8  ;;  %v362_v17 = vld [vmem:[%s1013_s6 + $0x8] sm:$0xff]  ;;  %s573_s10 = sshll.u32 %s837_s15, 6 }
  0x33   : > { %v330_v6 = vand.u32 %v555_v5, %v328_v4  ;;  %s395_s22 = scalar_lea.hbm %s1071_s3, %s573_s10  ;;  %s396_s15 = sshll.u32 %s265_s9, 4  ;;  %s397_s15 = int_to_ptr.vmem [resolvable:$true] %s396_s15 }
  0x34   : > { %s398_s28 = sshll.u32 %s395_s22, 4  ;;  %s381_s29 = scalar_lea.sflag [#allocation4], %s1001_s5  ;;  %s399_s28 = int_to_ptr.hbm [resolvable:$true] %s398_s28 }
  0x35   : > { %338 = vmatpush.bf16.msra.mxu0 %v330_v6  ;;  %574 = vmatpush.bf16.msra.mxu1 %v330_v6  ;;  %s769_s4 = sshra.s32 %s399_s28, 4  ;;  %s775_s7 = scalar_lea.hbm %s1071_s3, 128  ;;  %s770_s4 = int_to_ptr.hbm [resolvable:$true] %s769_s4 }
  0x36   : > { %575 = vmatpush.bf16.msra.mxu2 %v330_v6  ;;  %576 = vmatpush.bf16.msra.mxu3 %v330_v6  ;;  %s771_s26 = scalar_lea.hbm %s770_s4, 64  ;;  %p776_p10 = scmp.lt.s32.totalorder %s770_s4, %s1071_s3 }
  0x37   : > { %p772_p7 = scmp.ne.s32.totalorder %s770_s4, %s771_s26  ;;  %p777_p11 = scmp.lt.s32.totalorder %s775_s7, %s771_s26 }
  0x39   : > { %339 = vmatpush.bf16.msra.mxu0 %v571_v7  ;;  %577 = vmatpush.bf16.msra.mxu1 %v571_v7  ;;  %p773_p8 = pnand %p772_p7, %p966_p0  ;;  %p778_p12 = por %p777_p11, %p776_p10 }
  0x3a   : > { %578 = vmatpush.bf16.msra.mxu2 %v571_v7  ;;  %579 = vmatpush.bf16.msra.mxu3 %v571_v7 }
  0x3b   : > { %p774_p9 = pneg %p773_p8 }
  0x3c   : > { %556 = vmatmul.msk.bf16.vlgmr.msra.gmra.mxu0 %vm312_vm2, %v567_v8  ;;  %557 = vmatmul.msk.bf16.vlgmr.msra.gmra.mxu1 %vm312_vm2, %v568_v9 }
  0x3d   : > { %558 = vmatmul.msk.bf16.vlgmr.msra.gmra.mxu2 %vm312_vm2, %v569_v10  ;;  %559 = vmatmul.msk.bf16.vlgmr.msra.gmra.mxu3 %vm312_vm2, %v570_v11  ;;  %p779_p13 = pnand %p778_p12, %p774_p9 }
  0xb9   : > { %v341_v13 = vpop.f32.mrf.mxu0  ;;  %v346_v14 = vpop.f32.mrf.mxu1 }
  0xba   : > { %v363_v15 = vadd.f32 %v361_v12, %v341_v13  ;;  %v365_v16 = vadd.f32 %v361_v12, %v346_v14 }
  0xbc   : > { %372 = vst.msk [vmem:[%s265_s9] sm:$0xff] %vm371_vm3, %v363_v15 }
  0xbd   : > { %374 = vst.msk [vmem:[%s265_s9 + $0x10] sm:$0xff] %vm371_vm3, %v365_v16 }
  0xc0   : > { %v351_v18 = vpop.f32.mrf.mxu2  ;;  %v356_v19 = vpop.f32.mrf.mxu3 }
  0xc1   : > { %v367_v20 = vadd.f32 %v361_v12, %v351_v18  ;;  %v369_v21 = vadd.f32 %v361_v12, %v356_v19  ;;  %v343_v22 = vpop.f32.mrf.mxu0  ;;  %v348_v23 = vpop.f32.mrf.mxu1 }
  0xc2   : > { %v364_v24 = vadd.f32 %v362_v17, %v343_v22  ;;  %v366_v25 = vadd.f32 %v362_v17, %v348_v23 }
  0xc3   : > { %376 = vst.msk [vmem:[%s265_s9 + $0x20] sm:$0xff] %vm371_vm3, %v367_v20 }
  0xc4   : > { %378 = vst.msk [vmem:[%s265_s9 + $0x30] sm:$0xff] %vm371_vm3, %v369_v21 }
  0xc5   : > { %373 = vst.msk [vmem:[%s265_s9 + $0x8] sm:$0xff] %vm371_vm3, %v364_v24 }
  0xc6   : > { %375 = vst.msk [vmem:[%s265_s9 + $0x18] sm:$0xff] %vm371_vm3, %v366_v25 }
  0xc8   : > { %v353_v26 = vpop.f32.mrf.mxu2  ;;  %v358_v27 = vpop.f32.mrf.mxu3 }
  0xc9   : > { %v368_v28 = vadd.f32 %v362_v17, %v353_v26  ;;  %v370_v29 = vadd.f32 %v362_v17, %v358_v27 }
  0xcb   : > { %377 = vst.msk [vmem:[%s265_s9 + $0x28] sm:$0xff] %vm371_vm3, %v368_v28 }
  0xcc   : > { %379 = vst.msk [vmem:[%s265_s9 + $0x38] sm:$0xff] %vm371_vm3, %v370_v29 }
  0xcd   : > { %782 = shalt.err (!%p779_p13)
}
  0xce   : > { %s853_s5 = smov 128   ;;  %s854_s0 = smov 8  }
  0xcf   : > { %588 = dma.vmem_to_hbm [thread:$0]  (%p966_p0), %s397_s15, 1024, %s399_s28, %s381_s29, %s853_s5, %s853_s5, %s854_s0  }
  0xd0 PF: > { %s413_s6 = sand.u32 1, %s825_s12   ;;  %p602_p3 = pnand %p520_p4, %p970_p2 }
  0xd1   : > { %s414_s8 = scalar_lea.sflag [#allocation4], %s413_s6 }
  0xd2   : > { %p603_p5 = pneg %p602_p3 }
  0xd4   : > { %820 = dma.done.wait (%p603_p5), %s414_s8, 1024  }
  0xd5   : > { %822 = vsyncadd (%p603_p5), %s414_s8, 4294966272  ;;  %s20_s17 = sadd.s32 1, %s845_s17   ;;  %s1080_s12 = smov %s829_s13 }
  0xd6   : > { %p17_p1 = scmp.ge.s32.totalorder %s20_s17, 4   ;;  %s1081_s13 = smov %s833_s14 }
  0xd7   : > { %s1082_s14 = smov %s926_s24  ;;  %s1083_s15 = smov %s841_s16 }
  0xd8   : > { %s1084_s16 = smov %s1086_s18  ;;  %19 = sbr.rel (!%p17_p1) target bundleno = 9 (0x9), region = 92 }
  0xdd   :  { %420 = vsyncpa [#allocation3], 1 }
  0xde   :  { %422 = vsyncpa [#allocation3 + $0x1], 1 }
  0xdf   :  { %423 = vsyncpa [#allocation6], 1 }
  0xe0   :  { %424 = vsyncpa [#allocation4], 1 }
  0xe1   :  { %426 = vsyncpa [#allocation4 + $0x1], 1 }

</bundles_post_ra>
